<compile_context>
chip_gen: v5e
topology: v5e:2x2
jax: 0.10.0
libtpu: 0.0.40
codegen_flags: <defaults>
</compile_context>

<pallas_src>
import jax
import jax.numpy as jnp
from jax.experimental import pallas as pl
from jax.experimental.pallas import tpu as pltpu


def pos_attn_kernel(x_ref, v_ref, b_ref, o_ref):
    # x_ref: (C, TILE)  spatial tile of one batch element (channels on sublanes)
    # v_ref: (1, C)     folded weight row: fc2_w @ fc1_w @ conv_w   (x's dtype)
    # b_ref: (1, 1)     folded bias (SMEM f32 scalar): fc2_w @ fc1_w @ conv_b
    # o_ref: (C, TILE)
    x = x_ref[...]
    s = jnp.dot(v_ref[...], x,
                preferred_element_type=jnp.float32) + b_ref[0, 0]   # (1, TILE) f32
    gate = jax.nn.sigmoid(s)                                        # EUP exp/recip
    o_ref[...] = (x * gate).astype(o_ref.dtype)                     # bcast over C sublanes


def _max_block_bytes():
    """Per-chip target bytes for one x block (in+out double-buffered => ~4x this)."""
    try:
        kind = jax.devices()[0].device_kind.lower()
    except Exception:
        kind = ""
    if "v7" in kind:
        return 6 * 1024 * 1024   # 3.2 TB/s HBM: amortize ~0.35us/step overhead
    if "v6" in kind:
        return 4 * 1024 * 1024   # fits default-ish scoped VMEM comfortably
    return 2 * 1024 * 1024       # v5e / unknown: conservative


def _pick_tile(hw, c, dt_bytes, max_block_bytes):
    """Choose (tile, nt). tile is a multiple of 128 or the full HW extent."""
    max_tile = max(128, ((max_block_bytes // (c * dt_bytes)) // 128) * 128)

    if hw <= max_tile:
        tile, nt = hw, 1
    else:
        tile = max_tile
        # Prefer a 128-multiple that divides hw evenly (avoids masked tail
        # stores), but only if it stays within 2x of the target block size.
        if hw % tile != 0:
            cand = max_tile
            floor = max(128, max_tile // 2)
            while cand >= floor:
                if hw % cand == 0:
                    tile = cand
                    break
                cand -= 128
        nt = pl.cdiv(hw, tile)
    return tile, nt


def position_attention(x_nchw, conv_w, conv_b, fc1_w, fc2_w):
    """x_nchw: (B, C, H, W); conv_w: (Cr, C, 1, 1); conv_b: (Cr,);
    fc1_w: (Cr, Cr); fc2_w: (1, Cr).  Returns (B, C, H, W)."""
    b, c, h, w = x_nchw.shape
    cr = conv_w.shape[0]
    hw = h * w

    # Free reshape into (B, C, HW) -- no transposes.
    x_bchw = x_nchw.reshape(b, c, hw)

    # Fold the linear chain: s = (fc2 @ fc1 @ Wc) @ x_pix + (fc2 @ fc1 @ bc).
    wc = conv_w.reshape(cr, c).astype(jnp.float32)                 # (Cr, C)
    m = fc2_w.astype(jnp.float32) @ fc1_w.astype(jnp.float32)      # (1, Cr)
    v_row = (m @ wc).astype(x_nchw.dtype)                          # (1, C), match x dtype
    b_eff = (m @ conv_b.astype(jnp.float32).reshape(cr, 1))        # (1, 1), keep f32

    # Spatial tiling.
    dt_bytes = jnp.dtype(x_nchw.dtype).itemsize
    tile, nt = _pick_tile(hw, c, dt_bytes, _max_block_bytes())

    # Megacore occupancy: never emit a 1-step grid when it can be split
    # (v7x has 2 TensorCores; a single grid step would idle one of them).
    if b == 1 and nt == 1 and hw >= 256:
        tile = ((hw + 1) // 2 + 127) // 128 * 128
        nt = pl.cdiv(hw, tile)

    grid = (b, nt)

    out = pl.pallas_call(
        pos_attn_kernel,
        out_shape=jax.ShapeDtypeStruct((b, c, hw), x_nchw.dtype),
        grid_spec=pltpu.PrefetchScalarGridSpec(
            num_scalar_prefetch=0,
            grid=grid,
            in_specs=[
                # Squeezed batch dim -> kernel sees (C, TILE).
                pl.BlockSpec((None, c, tile), lambda i, j: (i, 0, j)),
                pl.BlockSpec((1, c), lambda i, j: (0, 0)),
                pl.BlockSpec(memory_space=pltpu.MemorySpace.SMEM),
            ],
            out_specs=pl.BlockSpec((None, c, tile), lambda i, j: (i, 0, j)),
        ),
        compiler_params=pltpu.CompilerParams(
            dimension_semantics=("parallel", "parallel"),
            vmem_limit_bytes=48 << 20),
    )(x_bchw, v_row, b_eff)

    return out.reshape(b, c, h, w)


def position_attention_ref(x_nchw, conv_w, conv_b, fc1_w, fc2_w):
    """Pure-JAX reference mirroring the PyTorch forward."""
    b, c, h, w = x_nchw.shape
    cr = conv_w.shape[0]
    # 1x1 conv == per-pixel matmul
    y = jnp.einsum('bchw,oc->bohw', x_nchw, conv_w.reshape(cr, c)) \
        + conv_b.reshape(1, cr, 1, 1)
    y = y.reshape(b, cr, h * w).transpose(0, 2, 1)        # (B, HW, Cr)
    y = y @ fc1_w.T                                       # (B, HW, Cr)  (no bias)
    y = y @ fc2_w.T                                       # (B, HW, 1)   (no bias)
    y = jax.nn.sigmoid(y).reshape(b, 1, h, w)
    return x_nchw * y


if __name__ == "__main__":
    key = jax.random.PRNGKey(0)

    # Test 1: B=2, single-tile spatial extent (grid = (2, 1)).
    B, C, H, W = 2, 64, 16, 16           # reduction=16 -> Cr = 4
    Cr = C // 16
    k0, k1, k2, k3, k4, k5 = jax.random.split(key, 6)
    x = jax.random.normal(k0, (B, C, H, W), dtype=jnp.float32)
    conv_w = jax.random.normal(k1, (Cr, C, 1, 1), dtype=jnp.float32) * 0.1
    conv_b = jax.random.normal(k2, (Cr,), dtype=jnp.float32) * 0.1
    fc1_w = jax.random.normal(k3, (Cr, Cr), dtype=jnp.float32) * 0.1
    fc2_w = jax.random.normal(k4, (1, Cr), dtype=jnp.float32) * 0.1

    out = jax.block_until_ready(position_attention(x, conv_w, conv_b, fc1_w, fc2_w))
    ref = position_attention_ref(x, conv_w, conv_b, fc1_w, fc2_w)
    assert out.shape == (B, C, H, W)
    assert jnp.allclose(out, ref, atol=2e-5, rtol=1e-5), "mismatch vs reference (test 1)"

    # Test 2: B=1 path (exercises the megacore split into nt=2 spatial tiles).
    B2, C2, H2, W2 = 1, 32, 64, 64
    Cr2 = C2 // 16
    j0, j1, j2, j3, j4 = jax.random.split(k5, 5)
    x2 = jax.random.normal(j0, (B2, C2, H2, W2), dtype=jnp.float32)
    cw2 = jax.random.normal(j1, (Cr2, C2, 1, 1), dtype=jnp.float32) * 0.1
    cb2 = jax.random.normal(j2, (Cr2,), dtype=jnp.float32) * 0.1
    f1w2 = jax.random.normal(j3, (Cr2, Cr2), dtype=jnp.float32) * 0.1
    f2w2 = jax.random.normal(j4, (1, Cr2), dtype=jnp.float32) * 0.1

    out2 = jax.block_until_ready(position_attention(x2, cw2, cb2, f1w2, f2w2))
    ref2 = position_attention_ref(x2, cw2, cb2, f1w2, f2w2)
    assert jnp.allclose(out2, ref2, atol=2e-5, rtol=1e-5), "mismatch vs reference (test 2)"

    print("KERNEL_OK")
</pallas_src>

<mosaic_0001>
module attributes {stable_mosaic.version = 11 : i64} {
  func.func @pos_attn_kernel(%arg0: i32, %arg1: i32, %arg2: memref<1x64x256xf32, #tpu.memory_space<vmem>>, %arg3: memref<1x64xf32, #tpu.memory_space<vmem>>, %arg4: memref<1x1xf32, #tpu.memory_space<smem>>, %arg5: memref<1x64x256xf32, #tpu.memory_space<vmem>>) attributes {dimension_semantics = [#tpu.dimension_semantics<parallel>, #tpu.dimension_semantics<parallel>], iteration_bounds = array<i64: 2, 1>, scalar_prefetch = 0 : i64, scratch_operands = 0 : i64, tpu.core_type = #tpu.core_type<tc>, window_params = [{transform_indices = @transform_0, window_bounds = array<i64: 1, 64, 256>}, {pipeline_mode = #tpu.pipeline_mode<synchronous>, transform_indices = @transform_1, window_bounds = array<i64: 1, 64>}, {transform_indices = @transform_2, window_bounds = array<i64: 1, 1>}, {transform_indices = @transform_3, window_bounds = array<i64: 1, 64, 256>}]} {
    %c0 = arith.constant 0 : index
    %c0_0 = arith.constant 0 : index
    %c0_1 = arith.constant 0 : index
    %0 = vector.load %arg2[%c0, %c0_0, %c0_1] : memref<1x64x256xf32, #tpu.memory_space<vmem>>, vector<1x64x256xf32>
    %1 = vector.shape_cast %0 : vector<1x64x256xf32> to vector<64x256xf32>
    %c0_2 = arith.constant 0 : index
    %c0_3 = arith.constant 0 : index
    %2 = vector.load %arg3[%c0_2, %c0_3] : memref<1x64xf32, #tpu.memory_space<vmem>>, vector<1x64xf32>
    %cst = arith.constant dense<0.000000e+00> : vector<1x256xf32>
    %3 = tpu.matmul %2, %1, %cst {dimension_numbers = #tpu.dot_dimension_numbers<[1], [0], [0], [1], [0, 0, 1, 1], [], []>} : vector<1x64xf32>, vector<64x256xf32>, vector<1x256xf32> -> vector<1x256xf32>
    %c0_4 = arith.constant 0 : index
    %c0_5 = arith.constant 0 : index
    %4 = memref.load %arg4[%c0_4, %c0_5] : memref<1x1xf32, #tpu.memory_space<smem>>
    %5 = vector.broadcast %4 : f32 to vector<1x256xf32>
    %6 = arith.addf %3, %5 : vector<1x256xf32>
    %7 = arith.negf %6 : vector<1x256xf32>
    %8 = math.exp %7 : vector<1x256xf32>
    %cst_6 = arith.constant 1.000000e+00 : f32
    %9 = vector.broadcast %cst_6 : f32 to vector<1x256xf32>
    %10 = arith.addf %9, %8 : vector<1x256xf32>
    %11 = arith.divf %9, %10 : vector<1x256xf32>
    %12 = vector.broadcast %11 : vector<1x256xf32> to vector<64x256xf32>
    %13 = arith.mulf %1, %12 : vector<64x256xf32>
    %c0_7 = arith.constant 0 : index
    %c0_8 = arith.constant 0 : index
    %c0_9 = arith.constant 0 : index
    %14 = vector.load %arg5[%c0_7, %c0_8, %c0_9] : memref<1x64x256xf32, #tpu.memory_space<vmem>>, vector<1x64x256xf32>
    %15 = vector.shape_cast %14 : vector<1x64x256xf32> to vector<64x256xf32>
    %16 = vector.shape_cast %13 : vector<64x256xf32> to vector<1x64x256xf32>
    tpu.vector_store %arg5[%c0_7, %c0_8, %c0_9], %16 {strides = array<i32>} : memref<1x64x256xf32, #tpu.memory_space<vmem>>, vector<1x64x256xf32>,
    return
  }
  func.func @transform_0(%arg0: i32, %arg1: i32) -> (i32, i32, i32) {
    %c0_i32 = arith.constant 0 : i32
    %c0_i32_0 = arith.constant 0 : i32
    return %arg0, %c0_i32, %arg1 : i32, i32, i32
  }
  func.func @transform_1(%arg0: i32, %arg1: i32) -> (i32, i32) {
    %c0_i32 = arith.constant 0 : i32
    %c0_i32_0 = arith.constant 0 : i32
    %c0_i32_1 = arith.constant 0 : i32
    return %c0_i32, %c0_i32_0 : i32, i32
  }
  func.func @transform_2(%arg0: i32, %arg1: i32) -> (i32, i32) {
    %c0_i32 = arith.constant 0 : i32
    %c0_i32_0 = arith.constant 0 : i32
    %c0_i32_1 = arith.constant 0 : i32
    return %c0_i32, %c0_i32_0 : i32, i32
  }
  func.func @transform_3(%arg0: i32, %arg1: i32) -> (i32, i32, i32) {
    %c0_i32 = arith.constant 0 : i32
    %c0_i32_0 = arith.constant 0 : i32
    return %arg0, %c0_i32, %arg1 : i32, i32, i32
  }
}

</mosaic_0001>

<bundles_post_ra>
// kernel: tpu_custom_call.1
= control target key start
LH: loop header
LB: loop body
LE: loop exit
PB: predicated region body
PF: predicated region fallthrough
CT: control target
= control target key end

     0   :  { %s890_s0 = inlined_call_operand.hbm [shape: f32[2,64,256], index: 0, kind: input, shape index: {}]   ;;  %s891_s1 = inlined_call_operand.vmem [shape: f32[1,64], index: 1, kind: input, shape index: {}]   ;;  %s892_s2 = inlined_call_operand.<no memory space> [shape: f32[1,1], index: 2, kind: input, shape index: {}]   ;;  %s893_s3 = inlined_call_operand.hbm [shape: f32[2,64,256], index: 3, kind: output, shape index: {}]  }
   0x1   :  { %8 = sst [smem:[#allocation2]] %s892_s2 }
   0x2   :  { %9 = vsyncpa [#allocation4], 0 }
   0x3   :  { %11 = vsyncpa [#allocation4 + $0x1], 0 }
   0x4   :  { %12 = vsyncpa [#allocation5], 0 }
   0x5   :  { %14 = vsyncpa [#allocation5 + $0x1], 0  ;;  %s688_s14 = smov 0   ;;  %s690_s15 = smov 0  }
   0x6   :  { %s692_s16 = smov 0   ;;  %s694_s17 = smov 0  }
   0x7   :  { %s696_s18 = smov 0   ;;  %s698_s19 = smov 0  }
   0x8 LB: > { %s452_s2 = sadd.s32 4294967295, %s659_s19   ;;  %s453_s20 = sadd.s32 4294967294, %s659_s19   ;;  %s659_s19 = sphi %s698_s19, %s20_s19   ;;  %s655_s18 = sphi %s696_s18, %s902_s18   ;;  %s651_s17 = sphi %s694_s17, %s901_s17   ;;  %s647_s16 = sphi %s692_s16, %s900_s16   ;;  %s643_s15 = sphi %s690_s15, %s899_s15   ;;  %s639_s14 = sphi %s688_s14, %s898_s14  }
   0x9   : > { %s32_s21 = sadd.s32 1, %s655_s18  ;;  %s41_s22 = sadd.s32 1, %s647_s16 }
   0xa   : > { %p34_p0 = scmp.ge.s32.totalorder %s32_s21, 2  ;;  %p48_p1 = scmp.ne.s32.totalorder %s647_s16, %s643_s15 }
   0xb   : > { %p49_p2 = scmp.eq.s32.totalorder %s659_s19, 0  ;;  %p54_p3 = scmp.ne.s32.totalorder %s643_s15, %s639_s14 }
   0xc   : > { %s904_s21 = smov (%p34_p0, %s32_s21), 0  ;;  %p55_p5 = scmp.eq.s32.totalorder %s452_s2, 0 }
   0xd   : > { %p729_p4 = por %p49_p2, %p48_p1  ;;  %s36_s24 = ssub.s32 %s655_s18, %s904_s21 }
   0xe   : > { %p122_p6 = scmp.eq.s32.totalorder %s452_s2, 1  ;;  %p39_p7 = scmp.eq.s32.totalorder %s36_s24, 0 }
   0xf   : > { %p735_p8 = por %p55_p5, %p54_p3  ;;  %p128_p10 = scmp.eq.s32.totalorder %s453_s20, 1 }
  0x10   : > { %p739_p9 = por %p122_p6, %p48_p1  ;;  %p455_p12 = scmp.ge.s32.totalorder %s659_s19, 2 }
  0x11   : > { %s744_s27 = scalar_select %p39_p7, %s647_s16, %s41_s22  }
  0x12   : > { %p746_p11 = por %p128_p10, %p54_p3  ;;  %p485_p13 = scmp.lt.s32.totalorder %s659_s19, 2 }
  0x13   : > { %s154_s29 = sand.u32 1, %s647_s16   ;;  %s471_s4 = sshll.u32 %s655_s18, 7 }
  0x14   : > { %s456_s30 = sshll.u32 %s154_s29, 7  ;;  %s165_s7 = scalar_lea.hbm %s890_s0, %s471_s4 }
  0x15   : > { %s158_s8 = scalar_lea.vmem [#allocation3], %s456_s30  ;;  %s166_s10 = sshll.u32 %s165_s7, 4  ;;  %s167_s10 = int_to_ptr.hbm [resolvable:$true] %s166_s10 }
  0x16   : > { %s168_s9 = sshll.u32 %s158_s8, 4  ;;  %p478_p0 = pnand %p485_p13, %p729_p4  ;;  %s169_s9 = int_to_ptr.vmem [resolvable:$true] %s168_s9 }
  0x17   : > { %p459_p1 = scmp.ge.s32.totalorder %s659_s19, 1  ;;  %s155_s11 = scalar_lea.sflag [#allocation4], %s154_s29 }
  0x18   : > { %s661_s12 = smov 256   ;;  %s662_s13 = smov 16  }
  0x19   : > { %480 = dma.hbm_to_vmem [thread:$0]  (!%p478_p0), %s167_s10, 2048, %s169_s9, %s155_s11, %s661_s12, %s661_s12, %s662_s13  }
  0x1a   : > { %p176_p2 = scmp.lt.s32.totalorder %s659_s19, 3 }
  0x1c   : > { %p177_p3 = pnand %p459_p1, %p176_p2 }
  0x1d   : > { %s762_s2 = sand.u32 (!%p177_p3), 1, %s643_s15  }
  0x1e   : > { %180 = sbr.rel (%p177_p3) target bundleno = 231 (0xe7), region = 32  ;;  %s460_s20 = sshll.u32 (!%p177_p3), %s762_s2, 7 }
  0x1f   : > { %s183_s22 = scalar_lea.sflag (!%p177_p3), [#allocation4], %s762_s2  ;;  %s186_s23 = scalar_lea.vmem (!%p177_p3), [#allocation3], %s460_s20 }
  0x23   : > { %630 = dma.done.wait (%p735_p8), %s183_s22, 2048  }
  0x24   : > { %632 = vsyncadd (%p735_p8), %s183_s22, 4294965248  ;;  %v772_v0 = vld [vmem:[%s186_s23 + $0x70] sm:$0xff]  ;;  %v774_v1 = vld [vmem:[%s186_s23 + $0x78] sm:$0xff]  ;;  %vm231_vm0 = vcmask 523264   ;;  %s229_s29 = sld [smem:[#allocation2]]  ;;  %s822_s30 = scalar_lea.vmem [#allocation6], %s460_s20 }
  0x25   : > { %v776_v2 = vld [vmem:[%s186_s23 + $0x60] sm:$0xff]  ;;  %243 = vmatpush.msra.mxu0 %v772_v0  ;;  %263 = vmatpush.msra.mxu1 %v774_v1  ;;  %v780_v3 = vld [vmem:[%s186_s23 + $0x68] sm:$0xff]  ;;  %v782_v4 = vld [vmem:[%s186_s23 + $0x50] sm:$0xff]  ;;  %s472_s4 = sshll.u32 %s651_s17, 7  ;;  %s362_s17 = sshll.u32 %s822_s30, 4  ;;  %s363_s17 = int_to_ptr.vmem [resolvable:$true] %s362_s17 }
  0x26   : > { %v784_v5 = vld [vmem:[%s186_s23 + $0x58] sm:$0xff]  ;;  %v788_v6 = vld [vmem:[%s186_s23 + $0x40] sm:$0xff]  ;;  %v790_v7 = vld [vmem:[%s186_s23 + $0x48] sm:$0xff]  ;;  %s361_s7 = scalar_lea.hbm %s893_s3, %s472_s4  ;;  %s348_s9 = scalar_lea.sflag [#allocation5], %s762_s2 }
  0x27   : > { %244 = vmatpush.msra.mxu0 %v776_v2  ;;  %264 = vmatpush.msra.mxu1 %v780_v3  ;;  %v794_v8 = vld [vmem:[%s186_s23 + $0x30] sm:$0xff]  ;;  %v796_v9 = vld [vmem:[%s186_s23 + $0x38] sm:$0xff]  ;;  %v800_v10 = vld [vmem:[%s186_s23 + $0x20] sm:$0xff]  ;;  %s364_s8 = sshll.u32 %s361_s7, 4  ;;  %s597_s20 = scalar_lea.hbm %s893_s3, 256  ;;  %s365_s8 = int_to_ptr.hbm [resolvable:$true] %s364_s8 }
  0x28   : > { %v802_v11 = vld [vmem:[%s186_s23 + $0x28] sm:$0xff]  ;;  %v214_v12 = vld [vmem:[%s186_s23 + $0x10] sm:$0xff]  ;;  %v806_v13 = vld [vmem:[%s186_s23 + $0x18] sm:$0xff]  ;;  %s591_s10 = sshra.s32 %s365_s8, 4  ;;  %s592_s10 = int_to_ptr.hbm [resolvable:$true] %s591_s10 }
  0x29   : > { %245 = vmatpush.msra.mxu0 %v782_v4  ;;  %265 = vmatpush.msra.mxu1 %v784_v5  ;;  %v212_v14 = vld [vmem:[%s186_s23] sm:$0xff]  ;;  %v810_v15 = vld [vmem:[%s186_s23 + $0x8] sm:$0xff]  ;;  %s593_s11 = scalar_lea.hbm %s592_s10, 128  ;;  %p598_p7 = scmp.lt.s32.totalorder %s592_s10, %s893_s3 }
  0x2a   : > { %v228_v16 = vld [vmem:[%s891_s1] sm:$0x1]  ;;  %v230_v17 = vstv %s229_s29  ;;  %p594_p4 = scmp.ne.s32.totalorder %s592_s10, %s593_s11  ;;  %p599_p8 = scmp.lt.s32.totalorder %s597_s20, %s593_s11 }
  0x2b   : > { %246 = vmatpush.msra.mxu0 %v788_v6  ;;  %266 = vmatpush.msra.mxu1 %v790_v7 }
  0x2c   : > { %p595_p5 = pnand %p594_p4, %p739_p9  ;;  %p600_p10 = por %p599_p8, %p598_p7 }
  0x2d   : > { %247 = vmatpush.msra.mxu0 %v794_v8  ;;  %267 = vmatpush.msra.mxu1 %v796_v9 }
  0x2e   : > { %p596_p6 = pneg %p595_p5 }
  0x2f   : > { %248 = vmatpush.msra.mxu0 %v800_v10  ;;  %268 = vmatpush.msra.mxu1 %v802_v11 }
  0x30   : > { %p601_p13 = pnand %p600_p10, %p596_p6 }
  0x31   : > { %249 = vmatpush.msra.mxu0 %v214_v12  ;;  %269 = vmatpush.msra.mxu1 %v806_v13 }
  0x33   : > { %250 = vmatpush.msra.mxu0 %v212_v14  ;;  %270 = vmatpush.msra.mxu1 %v810_v15 }
  0x34   : > { %462 = vmatmul.msk.f32.vlgmr.msra.gmra.mxu0 %vm231_vm0, %v228_v16  ;;  %463 = vmatmul.msk.f32.vlgmr.msra.gmra.mxu1 %vm231_vm0, %v228_v16 }
  0xb1   : > { %v252_v18 = vpop.f32.mrf.mxu0  ;;  %v272_v19 = vpop.f32.mrf.mxu1 }
  0xb2   : > { %v253_v20 = vadd.f32 %v252_v18, %v230_v17  ;;  %v273_v21 = vadd.f32 %v272_v19, %v230_v17 }
  0xb4   : > { %v464_v22 = vmul.f32 -1.442695, %v253_v20  ;;  %v465_v23 = vmul.f32 -1.442695, %v273_v21 }
  0xb6   : > { %539 = vpow2.f32 %v464_v22 }
  0xb7   : > { %541 = vpow2.f32 %v465_v23 }
  0xbc   : > { %v540_v24 = vpop.eup %539 }
  0xbd   : > { %v542_v25 = vpop.eup %541  ;;  %v281_v26 = vadd.f32 1.0, %v540_v24 }
  0xbe   : > { %v282_v27 = vadd.f32 1.0, %v542_v25 }
  0xbf   : > { %543 = vrcp.f32 %v281_v26  ;;  %v294_v33 = vand.u32 2147483648, %v281_v26  ;;  %v292_v36 = vand.u32 2147483647, %v281_v26  ;;  %vm288_vm3 = vweird.f32 %v281_v26 }
  0xc0   : > { %545 = vrcp.f32 %v282_v27  ;;  %v309_v38 = vand.u32 2147483648, %v282_v27  ;;  %v307_v40 = vand.u32 2147483647, %v282_v27  ;;  %vm303_vm5 = vweird.f32 %v282_v27 }
  0xc1   : > { %v295_v41 = vor.u32 1.1754944e-38, %v294_v33  ;;  %vm293_vm6 = vcmp.eq.f32.partialorder %v292_v36, 8.507059e+37 }
  0xc2   : > { %v310_v46 = vor.u32 1.1754944e-38, %v309_v38  ;;  %vm308_vm8 = vcmp.eq.f32.partialorder %v307_v40, 8.507059e+37 }
  0xc5   : > { %v544_v28 = vpop.eup %543 }
  0xc6   : > { %v546_v29 = vpop.eup %545  ;;  %v284_v30 = vmul.f32 %v544_v28, %v281_v26  ;;  %vm289_vm1 = vweird.f32 %v544_v28 }
  0xc7   : > { %v299_v31 = vmul.f32 %v546_v29, %v282_v27  ;;  %vm304_vm2 = vweird.f32 %v546_v29  ;;  %vm290_vm4 = vmor %vm288_vm3, %vm289_vm1 }
  0xc8   : > { %v285_v32 = vsub.f32 1.0, %v284_v30  ;;  %vm305_vm7 = vmor %vm303_vm5, %vm304_vm2 }
  0xc9   : > { %v300_v34 = vsub.f32 1.0, %v299_v31 }
  0xca   : > { %v286_v35 = vmul.f32 %v544_v28, %v285_v32 }
  0xcb   : > { %v301_v37 = vmul.f32 %v546_v29, %v300_v34 }
  0xcc   : > { %v287_v39 = vadd.f32 %v544_v28, %v286_v35 }
  0xcd   : > { %v302_v42 = vadd.f32 %v546_v29, %v301_v37 }
  0xce   : > { %v291_v43 = vsel %vm290_vm4, %v544_v28, %v287_v39 }
  0xcf   : > { %v296_v44 = vsel %vm293_vm6, %v295_v41, %v291_v43  ;;  %v306_v45 = vsel %vm305_vm7, %v546_v29, %v302_v42 }
  0xd0   : > { %v313_v47 = vperm.slane %v296_v44, 0  ;;  %v311_v48 = vsel %vm308_vm8, %v310_v46, %v306_v45 }
  0xd1   : > { %v314_v54 = vperm.slane %v311_v48, 0 }
  0xd2   : > { %v315_v49 = vmul.f32 %v313_v47, %v212_v14  ;;  %v317_v50 = vmul.f32 %v313_v47, %v214_v12  ;;  %v319_v51 = vmul.f32 %v313_v47, %v800_v10  ;;  %v321_v52 = vmul.f32 %v313_v47, %v794_v8 }
  0xd3   : > { %v323_v53 = vmul.f32 %v313_v47, %v788_v6  ;;  %v325_v55 = vmul.f32 %v313_v47, %v782_v4  ;;  %v327_v56 = vmul.f32 %v313_v47, %v776_v2  ;;  %v329_v57 = vmul.f32 %v313_v47, %v772_v0 }
  0xd4   : > { %331 = vst [vmem:[%s822_s30] sm:$0xff] %v315_v49  ;;  %v316_v58 = vmul.f32 %v314_v54, %v810_v15  ;;  %v318_v59 = vmul.f32 %v314_v54, %v806_v13  ;;  %v320_v60 = vmul.f32 %v314_v54, %v802_v11  ;;  %v322_v61 = vmul.f32 %v314_v54, %v796_v9 }
  0xd5   : > { %333 = vst [vmem:[%s822_s30 + $0x10] sm:$0xff] %v317_v50  ;;  %v324_v62 = vmul.f32 %v314_v54, %v790_v7  ;;  %v326_v63 = vmul.f32 %v314_v54, %v784_v5  ;;  %v328_v0 = vmul.f32 %v314_v54, %v780_v3  ;;  %v330_v2 = vmul.f32 %v314_v54, %v774_v1 }
  0xd6   : > { %335 = vst [vmem:[%s822_s30 + $0x20] sm:$0xff] %v319_v51 }
  0xd7   : > { %337 = vst [vmem:[%s822_s30 + $0x30] sm:$0xff] %v321_v52 }
  0xd8   : > { %339 = vst [vmem:[%s822_s30 + $0x40] sm:$0xff] %v323_v53 }
  0xd9   : > { %341 = vst [vmem:[%s822_s30 + $0x50] sm:$0xff] %v325_v55 }
  0xda   : > { %343 = vst [vmem:[%s822_s30 + $0x60] sm:$0xff] %v327_v56 }
  0xdb   : > { %345 = vst [vmem:[%s822_s30 + $0x70] sm:$0xff] %v329_v57 }
  0xdc   : > { %332 = vst [vmem:[%s822_s30 + $0x8] sm:$0xff] %v316_v58 }
  0xdd   : > { %334 = vst [vmem:[%s822_s30 + $0x18] sm:$0xff] %v318_v59 }
  0xde   : > { %336 = vst [vmem:[%s822_s30 + $0x28] sm:$0xff] %v320_v60 }
  0xdf   : > { %338 = vst [vmem:[%s822_s30 + $0x38] sm:$0xff] %v322_v61 }
  0xe0   : > { %340 = vst [vmem:[%s822_s30 + $0x48] sm:$0xff] %v324_v62 }
  0xe1   : > { %342 = vst [vmem:[%s822_s30 + $0x58] sm:$0xff] %v326_v63 }
  0xe2   : > { %344 = vst [vmem:[%s822_s30 + $0x68] sm:$0xff] %v328_v0 }
  0xe3   : > { %346 = vst [vmem:[%s822_s30 + $0x78] sm:$0xff] %v330_v2 }
  0xe4   : > { %604 = shalt.err (!%p601_p13)
}
  0xe5   : > { %s663_s2 = smov 256   ;;  %s664_s24 = smov 16  }
  0xe6   : > { %475 = dma.vmem_to_hbm [thread:$0]  (%p739_p9), %s363_s17, 2048, %s365_s8, %s348_s9, %s663_s2, %s663_s2, %s664_s24  }
  0xe7 PF: > { %s379_s25 = sand.u32 1, %s639_s14   ;;  %p482_p0 = pnand %p455_p12, %p746_p11 }
  0xe8   : > { %s380_s29 = scalar_lea.sflag [#allocation5], %s379_s25 }
  0xe9   : > { %p483_p1 = pneg %p482_p0 }
  0xeb   : > { %634 = dma.done.wait (%p483_p1), %s380_s29, 2048  }
  0xec   : > { %636 = vsyncadd (%p483_p1), %s380_s29, 4294965248  ;;  %s20_s19 = sadd.s32 1, %s659_s19   ;;  %s898_s14 = smov %s643_s15 }
  0xed   : > { %p17_p2 = scmp.ge.s32.totalorder %s20_s19, 4   ;;  %s899_s15 = smov %s647_s16 }
  0xee   : > { %s900_s16 = smov %s744_s27  ;;  %s901_s17 = smov %s655_s18 }
  0xef   : > { %s902_s18 = smov %s904_s21  ;;  %19 = sbr.rel (!%p17_p2) target bundleno = 8 (0x8), region = 77 }
  0xf4   :  { %386 = vsyncpa [#allocation4], 1 }
  0xf5   :  { %388 = vsyncpa [#allocation4 + $0x1], 1 }
  0xf6   :  { %389 = vsyncpa [#allocation5], 1 }
  0xf7   :  { %391 = vsyncpa [#allocation5 + $0x1], 1 }

</bundles_post_ra>
